<compile_context>
chip_gen: v7x
topology: tpu7x:2x2x1
jax: 0.10.0
libtpu: 0.0.40
codegen_flags: <defaults>
</compile_context>

<pallas_src>
import jax
import jax.numpy as jnp
from jax.experimental import pallas as pl
from jax.experimental.pallas import tpu as pltpu


def _round_up(n, m):
    return ((n + m - 1) // m) * m


def _choose_tb(batch, max_tb=128):
    """Batch tile: multiple of 8, <=128, and >=2 tiles whenever B permits."""
    if batch <= 8:
        return batch                                   # block == full dim
    return min(max_tb, max(8, (batch // 2 // 8) * 8))  # guarantees >=2 tiles


def _vmem_budgets():
    """(vmem_limit_bytes, per-x-block budget) — generation aware, safe fallback."""
    vmem_limit = 32 * 1024 * 1024       # safe scoped limit on every generation
    x_block_budget = 6 * 1024 * 1024    # per x block; x2 for double buffering
    try:
        cap = pltpu.get_tpu_info().vmem_capacity_bytes
        if cap >= 96 * 1024 * 1024:     # v5e / v6e: 128 MiB physical VMEM
            vmem_limit = 96 * 1024 * 1024
            x_block_budget = 12 * 1024 * 1024
    except Exception:
        pass                            # unknown chip -> conservative (v7x-safe)
    return vmem_limit, x_block_budget


def _make_kernel(t_total, tt):
    """Grid = (B tiles, T tiles); T is the last ('arbitrary') reduction axis.

    x_ref  : (tb, tt, D)   current (batch-tile, time-tile) slab of features
    w_ref  : (D, Ep)       projection weights (lane-padded E), resident
    b_ref  : (1, Ep)       bias, f32, lane-padded, resident
    o_ref  : (tb, Ep)      output embeddings (resident across the T axis)
    acc_ref: (tb, D) f32   temporal-sum accumulator (VMEM scratch)
    """
    rem = t_total % tt            # static: valid frames in the last T tile
    inv_t = 1.0 / float(t_total)  # static: mean scale, applied in finalize

    def kernel(x_ref, w_ref, b_ref, o_ref, acc_ref):
        t = pl.program_id(1)
        nt = pl.num_programs(1)

        @pl.when(t == 0)
        def _init():
            acc_ref[...] = jnp.zeros_like(acc_ref)

        if rem == 0:
            # Every T tile is full: fused bf16->f32 convert + reduce.
            acc_ref[...] += jnp.sum(x_ref[...], axis=1, dtype=jnp.float32)
        else:
            @pl.when(t < nt - 1)
            def _full_tile():
                acc_ref[...] += jnp.sum(x_ref[...], axis=1, dtype=jnp.float32)

            @pl.when(t == nt - 1)
            def _tail_tile():
                # Only the first `rem` frames of the last tile are real data;
                # static slice, frames past T are never touched.
                acc_ref[...] += jnp.sum(x_ref[:, :rem, :], axis=1,
                                        dtype=jnp.float32)

        @pl.when(t == nt - 1)
        def _finalize():
            pooled = acc_ref[...] * jnp.float32(inv_t)       # mean, f32
            emb = jnp.dot(pooled, w_ref[...].astype(jnp.float32),
                          preferred_element_type=jnp.float32)
            o_ref[...] = (emb + b_ref[...]).astype(o_ref.dtype)

    return kernel


def prepare_params(w, b):
    """One-time parameter prep: pad E to a lane-dense multiple of 128.

    Hoisted out of the per-call path; under jit with constant weights XLA
    constant-folds this entirely.
    """
    d, e = w.shape
    ep = _round_up(e, 128)
    w_p = jnp.pad(w, ((0, 0), (0, ep - e)))
    b_p = jnp.pad(jnp.reshape(b, (1, e)).astype(jnp.float32),
                  ((0, 0), (0, ep - e)))
    return w_p, b_p, e


def speaker_module_forward(x, w_p, b_p, e_true, *, tb=None, tt=None):
    """Inner module forward: temporal mean pooling + linear projection."""
    B, T, D = x.shape
    dw, Ep = w_p.shape
    assert dw == D, "weight rows must match feature dim"

    vmem_limit, x_block_budget = _vmem_budgets()

    if tb is None:
        tb = _choose_tb(B)
    tb = max(1, min(tb, B)) if B <= 8 else max(8, min((tb // 8) * 8, 128))

    if tt is None:
        # Largest T tile whose x block fits the per-buffer budget
        # (double-buffered by the BlockSpec pipeline -> 2x this resident).
        row_bytes = tb * D * x.dtype.itemsize
        tt = x_block_budget // max(row_bytes, 1)
    if tt >= T:
        tt = T                                  # full dim: no 8-alignment needed
    else:
        tt = max(8, (tt // 8) * 8)

    grid = (pl.cdiv(B, tb), pl.cdiv(T, tt))

    cost = pl.CostEstimate(
        flops=int(B * T * D + 2 * B * D * Ep + B * Ep),
        transcendentals=0,
        bytes_accessed=int(x.size * x.dtype.itemsize
                           + w_p.size * w_p.dtype.itemsize
                           + b_p.size * b_p.dtype.itemsize
                           + B * Ep * 4),
    )

    out = pl.pallas_call(
        _make_kernel(T, tt),
        out_shape=jax.ShapeDtypeStruct((B, Ep), jnp.float32),
        grid_spec=pltpu.PrefetchScalarGridSpec(
            num_scalar_prefetch=0,
            grid=grid,
            in_specs=[
                pl.BlockSpec((tb, tt, D), lambda i, t: (i, t, 0)),
                pl.BlockSpec((D, Ep), lambda i, t: (0, 0)),   # resident weights
                pl.BlockSpec((1, Ep), lambda i, t: (0, 0)),   # resident bias
            ],
            out_specs=pl.BlockSpec((tb, Ep), lambda i, t: (i, 0)),
            scratch_shapes=[pltpu.VMEM((tb, D), jnp.float32)],
        ),
        compiler_params=pltpu.CompilerParams(
            dimension_semantics=("parallel", "arbitrary"),
            vmem_limit_bytes=vmem_limit,
        ),
        cost_estimate=cost,
    )(x, w_p, b_p)

    return out[:, :e_true]


def wrapped_model_forward(params, x, label=None):
    """WrappedModel.forward(x, label): pure delegation to the inner module.

    `label` is accepted for API parity; the inner embedding module ignores it
    (as in evaluation-mode SpeakerNet forwards).
    """
    # TODO(synk): WrappedModel wraps an *arbitrary* nn.Module; only this
    # representative mean-pool + projection inner module is kernelized here.
    w_p, b_p, e_true = params
    return speaker_module_forward(x, w_p, b_p, e_true)


if __name__ == "__main__":
    # Small deterministic shapes consistent with the forward pass.
    B, T, D, E = 16, 40, 32, 64

    key = jax.random.PRNGKey(0)
    kx, kw, kb = jax.random.split(key, 3)

    # bf16 features / weights; all accumulation is f32 in-kernel.
    x = jax.random.normal(kx, (B, T, D), dtype=jnp.float32).astype(jnp.bfloat16)
    w = (jax.random.normal(kw, (D, E), dtype=jnp.float32) * 0.1).astype(jnp.bfloat16)
    b = jax.random.normal(kb, (1, E), dtype=jnp.float32) * 0.01
    label = jnp.arange(B, dtype=jnp.int32)   # passed through, unused (eval forward)

    params = prepare_params(w, b)            # one-time, hoisted param prep
    out = wrapped_model_forward(params, x, label)
    out = jax.block_until_ready(out)

    # Reference in plain JAX (same math, f32).
    ref = jnp.mean(x.astype(jnp.float32), axis=1) @ w.astype(jnp.float32) + b
    assert out.shape == (B, E)
    assert jnp.allclose(out, ref, atol=1e-3, rtol=1e-3), float(
        jnp.max(jnp.abs(out - ref)))

    # Also exercise the multi-step T reduction and the partial-tail-tile path
    # (T=40 with tt=16 -> 3 T tiles, last tile has 8 valid frames).
    w_p, b_p, e_true = params
    out_tiled = speaker_module_forward(x, w_p, b_p, e_true, tt=16)
    out_tiled = jax.block_until_ready(out_tiled)
    assert jnp.allclose(out_tiled, ref, atol=1e-3, rtol=1e-3), float(
        jnp.max(jnp.abs(out_tiled - ref)))

    print("KERNEL_OK")
</pallas_src>

<mosaic_0001>
module attributes {stable_mosaic.version = 11 : i64} {
  func.func @kernel(%arg0: i32, %arg1: i32, %arg2: memref<8x40x32xbf16, #tpu.memory_space<vmem>>, %arg3: memref<32x128xbf16, #tpu.memory_space<vmem>>, %arg4: memref<1x128xf32, #tpu.memory_space<vmem>>, %arg5: memref<8x128xf32, #tpu.memory_space<vmem>>, %arg6: memref<8x32xf32, #tpu.memory_space<vmem>>) attributes {dimension_semantics = [#tpu.dimension_semantics<parallel>, #tpu.dimension_semantics<arbitrary>], iteration_bounds = array<i64: 2, 1>, scalar_prefetch = 0 : i64, scratch_operands = 1 : i64, tpu.core_type = #tpu.core_type<tc>, window_params = [{transform_indices = @transform_0, window_bounds = array<i64: 8, 40, 32>}, {pipeline_mode = #tpu.pipeline_mode<synchronous>, transform_indices = @transform_1, window_bounds = array<i64: 32, 128>}, {pipeline_mode = #tpu.pipeline_mode<synchronous>, transform_indices = @transform_2, window_bounds = array<i64: 1, 128>}, {transform_indices = @transform_3, window_bounds = array<i64: 8, 128>}]} {
    %c0_i32 = arith.constant 0 : i32
    %0 = arith.cmpi eq, %arg1, %c0_i32 : i32
    %1 = arith.extui %0 : i1 to i32
    %c0_i32_0 = arith.constant 0 : i32
    %2 = arith.cmpi ne, %1, %c0_i32_0 : i32
    scf.if %2 {
      %cst_9 = arith.constant 0.000000e+00 : f32
      %12 = vector.broadcast %cst_9 : f32 to vector<8x32xf32>
      %c0_10 = arith.constant 0 : index
      %c0_11 = arith.constant 0 : index
      %13 = vector.load %arg6[%c0_10, %c0_11] : memref<8x32xf32, #tpu.memory_space<vmem>>, vector<8x32xf32>
      tpu.vector_store %arg6[%c0_10, %c0_11], %12 {strides = array<i32>} : memref<8x32xf32, #tpu.memory_space<vmem>>, vector<8x32xf32>,
    } else {
    }
    %c0 = arith.constant 0 : index
    %c0_1 = arith.constant 0 : index
    %3 = vector.load %arg6[%c0, %c0_1] : memref<8x32xf32, #tpu.memory_space<vmem>>, vector<8x32xf32>
    %c0_2 = arith.constant 0 : index
    %c0_3 = arith.constant 0 : index
    %c0_4 = arith.constant 0 : index
    %4 = vector.load %arg2[%c0_2, %c0_3, %c0_4] : memref<8x40x32xbf16, #tpu.memory_space<vmem>>, vector<8x40x32xbf16>
    %5 = arith.extf %4 : vector<8x40x32xbf16> to vector<8x40x32xf32>
    %cst = arith.constant dense<0.000000e+00> : vector<8x32xf32>
    %6 = vector.multi_reduction <add>, %5, %cst [1] : vector<8x40x32xf32> to vector<8x32xf32>
    %7 = arith.addf %3, %6 : vector<8x32xf32>
    %c0_5 = arith.constant 0 : index
    %c0_6 = arith.constant 0 : index
    %8 = vector.load %arg6[%c0_5, %c0_6] : memref<8x32xf32, #tpu.memory_space<vmem>>, vector<8x32xf32>
    tpu.vector_store %arg6[%c0_5, %c0_6], %7 {strides = array<i32>} : memref<8x32xf32, #tpu.memory_space<vmem>>, vector<8x32xf32>,
    %c0_i32_7 = arith.constant 0 : i32
    %9 = arith.cmpi eq, %arg1, %c0_i32_7 : i32
    %10 = arith.extui %9 : i1 to i32
    %c0_i32_8 = arith.constant 0 : i32
    %11 = arith.cmpi ne, %10, %c0_i32_8 : i32
    scf.if %11 {
      %c0_9 = arith.constant 0 : index
      %c0_10 = arith.constant 0 : index
      %12 = vector.load %arg6[%c0_9, %c0_10] : memref<8x32xf32, #tpu.memory_space<vmem>>, vector<8x32xf32>
      %cst_11 = arith.constant 2.500000e-02 : f32
      %13 = vector.broadcast %cst_11 : f32 to vector<8x32xf32>
      %14 = arith.mulf %12, %13 : vector<8x32xf32>
      %c0_12 = arith.constant 0 : index
      %c0_13 = arith.constant 0 : index
      %15 = vector.load %arg3[%c0_12, %c0_13] : memref<32x128xbf16, #tpu.memory_space<vmem>>, vector<32x128xbf16>
      %16 = arith.extf %15 : vector<32x128xbf16> to vector<32x128xf32>
      %cst_14 = arith.constant dense<0.000000e+00> : vector<8x128xf32>
      %17 = tpu.matmul %14, %16, %cst_14 {dimension_numbers = #tpu.dot_dimension_numbers<[1], [0], [0], [1], [0, 0, 1, 1], [], []>} : vector<8x32xf32>, vector<32x128xf32>, vector<8x128xf32> -> vector<8x128xf32>
      %c0_15 = arith.constant 0 : index
      %c0_16 = arith.constant 0 : index
      %18 = vector.load %arg4[%c0_15, %c0_16] : memref<1x128xf32, #tpu.memory_space<vmem>>, vector<1x128xf32>
      %19 = vector.broadcast %18 : vector<1x128xf32> to vector<8x128xf32>
      %20 = arith.addf %17, %19 : vector<8x128xf32>
      %c0_17 = arith.constant 0 : index
      %c0_18 = arith.constant 0 : index
      %21 = vector.load %arg5[%c0_17, %c0_18] : memref<8x128xf32, #tpu.memory_space<vmem>>, vector<8x128xf32>
      tpu.vector_store %arg5[%c0_17, %c0_18], %20 {strides = array<i32>} : memref<8x128xf32, #tpu.memory_space<vmem>>, vector<8x128xf32>,
    } else {
    }
    return
  }
  func.func @transform_0(%arg0: i32, %arg1: i32) -> (i32, i32, i32) {
    %c0_i32 = arith.constant 0 : i32
    %c0_i32_0 = arith.constant 0 : i32
    return %arg0, %arg1, %c0_i32 : i32, i32, i32
  }
  func.func @transform_1(%arg0: i32, %arg1: i32) -> (i32, i32) {
    %c0_i32 = arith.constant 0 : i32
    %c0_i32_0 = arith.constant 0 : i32
    %c0_i32_1 = arith.constant 0 : i32
    return %c0_i32, %c0_i32_0 : i32, i32
  }
  func.func @transform_2(%arg0: i32, %arg1: i32) -> (i32, i32) {
    %c0_i32 = arith.constant 0 : i32
    %c0_i32_0 = arith.constant 0 : i32
    %c0_i32_1 = arith.constant 0 : i32
    return %c0_i32, %c0_i32_0 : i32, i32
  }
  func.func @transform_3(%arg0: i32, %arg1: i32) -> (i32, i32) {
    %c0_i32 = arith.constant 0 : i32
    %c0_i32_0 = arith.constant 0 : i32
    return %arg0, %c0_i32 : i32, i32
  }
}

</mosaic_0001>

<bundles_post_ra>
// kernel: tpu_custom_call.1
= control target key start
LH: loop header
LB: loop body
LE: loop exit
PB: predicated region body
PF: predicated region fallthrough
CT: control target
= control target key end

     0   :  { %8 = vsyncpa [#allocation4], 0  ;;  %s1195_s0 = inlined_call_operand.vmem [shape: bf16[16,40,32], index: 0, kind: input, shape index: {}]   ;;  %s1196_s1 = inlined_call_operand.vmem [shape: bf16[32,128], index: 1, kind: input, shape index: {}]   ;;  %s1197_s2 = inlined_call_operand.vmem [shape: f32[1,128], index: 2, kind: input, shape index: {}]   ;;  %s1198_s3 = inlined_call_operand.hbm [shape: f32[16,128], index: 3, kind: output, shape index: {}]  }
   0x1   :  { %10 = vsyncpa [#allocation4 + $0x1], 0  ;;  %s923_s12 = smov 0   ;;  %s925_s13 = smov 0  }
   0x2   :  { %s927_s14 = smov 0   ;;  %s929_s15 = smov 0  }
   0x3   :  { %s931_s16 = smov 0   ;;  %s933_s17 = smov 0  }
   0x4 LB: > { %s616_s18 = sadd.s32 4294967295, %s897_s17   ;;  %s617_s19 = sadd.s32 4294967294, %s897_s17   ;;  %s897_s17 = sphi %s933_s17, %s16_s17   ;;  %s893_s16 = sphi %s931_s16, %s1205_s16   ;;  %s889_s15 = sphi %s929_s15, %s1204_s15   ;;  %s885_s14 = sphi %s927_s14, %s1203_s14   ;;  %s881_s13 = sphi %s925_s13, %s1202_s13   ;;  %s877_s12 = sphi %s923_s12, %s1201_s12  }
   0x5   : > { %s28_s20 = sadd.s32 1, %s893_s16  ;;  %s105_s21 = sadd.s32 1, %s885_s14 }
   0x6   : > { %p30_p0 = scmp.ge.s32.totalorder %s28_s20, 2  ;;  %p115_p1 = scmp.ne.s32.totalorder %s885_s14, %s881_s13 }
   0x7   : > { %p116_p2 = scmp.eq.s32.totalorder %s616_s18, 1  ;;  %p121_p3 = scmp.ne.s32.totalorder %s881_s13, %s877_s12 }
   0x8   : > { %s1207_s20 = smov (%p30_p0, %s28_s20), 0  ;;  %p122_p5 = scmp.eq.s32.totalorder %s617_s19, 1 }
   0x9   : > { %p963_p4 = por %p116_p2, %p115_p1  ;;  %s102_s23 = ssub.s32 %s893_s16, %s1207_s20 }
   0xa   : > { %p620_p6 = scmp.ge.s32.totalorder %s897_s17, 1  ;;  %p103_p7 = scmp.eq.s32.totalorder %s102_s23, 0 }
   0xb   : > { %p970_p8 = por %p122_p5, %p121_p3  ;;  %p161_p9 = scmp.lt.s32.totalorder %s897_s17, 3 }
   0xc   : > { %s976_s25 = scalar_select %p103_p7, %s885_s14, %s105_s21  }
   0xd   : > { %p162_p10 = pnand %p620_p6, %p161_p9 }
   0xe   : > { %v711_v0 = vld [vmem:[%s1196_s1] sm:$0xff] (!%p162_p10)   ;;  %s622_s28 = sshll.u32 (!%p162_p10), %s889_s15, 3  ;;  %vm206_vm0 = vcmask (!%p162_p10), 261120   ;;  %v899_v1 = vmov (!%p162_p10), 0.0|0.0   ;;  %v900_v2 = vmov (!%p162_p10), 0.0   ;;  %v737_v3 = vld [vmem:[%s1196_s1 + $0x8] sm:$0xff] (!%p162_p10)  }
   0xf   : > { %165 = sbr.rel (%p162_p10) target bundleno = 321 (0x141), region = 32  ;;  %754 = vmatprep.subr.bf16.mxu0 (!%p162_p10), %v899_v1  ;;  %p192_p11 = scmp.lt.s32.totalorder (!%p162_p10), %s622_s28, 15  ;;  %207 = vst.msk [vmem:[#allocation2] sm:$0xff] (!%p162_p10), %vm206_vm0, %v900_v2  ;;  %vm901_vm1 = vmmov (!%p162_p10), 0   ;;  %vm418_vm2 = vcmask (!%p162_p10), 1041409   ;;  %vm420_vm3 = vcmask (!%p162_p10), 1042434  }
  0x10   : > { %756 = vmatpush3.bf16.msra.mxu0 (!%p162_p10), %v711_v0  ;;  %751 = vmatprep.mubr.msk.f32.mxu0 (!%p162_p10), %vm901_vm1, %v900_v2  ;;  %vm422_vm4 = vcmask (!%p162_p10), 1043459   ;;  %vm424_vm5 = vcmask (!%p162_p10), 1044484   ;;  %vm426_vm6 = vcmask (!%p162_p10), 1045509   ;;  %vm428_vm7 = vcmask (!%p162_p10), 1046534   ;;  %s187_s8 = sand.u32 (!%p162_p10), 1, %s881_s13   ;;  %s627_s18 = sshll.u32 (!%p162_p10), %s889_s15, 7 }
  0x11   : > { %757 = vmatprep.subr.bf16.mxu0 (!%p162_p10), %v899_v1  ;;  %vm430_vm8 = vcmask (!%p162_p10), 1047559   ;;  %s621_s9 = sshll.u32 (!%p162_p10), %s187_s8, 3  ;;  %s1148_s27 = scalar_lea.hbm (!%p162_p10), %s1198_s3, %s627_s18 }
  0x12   : > { %s189_s19 = scalar_lea.vmem (!%p162_p10), [#allocation3], %s621_s9  ;;  %s902_s15 = smov (!%p162_p10), [#allocation3]  }
  0x13   : > { %s543_s21 = sshll.u32 (!%p162_p10), %s189_s19, 4  ;;  %s823_s30 = sshll.u32 (!%p162_p10), %s902_s15, 4  ;;  %s1150_s21 = int_to_ptr.vmem [resolvable:$true] %s543_s21  ;;  %s824_s30 = int_to_ptr.vmem [resolvable:$false] %s823_s30 }
  0x14   : > { %759 = vmatpush3.bf16.msra.mxu0 (!%p162_p10), %v737_v3  ;;  %s819_s29 = scalar_lea.vmem (!%p162_p10), %s1150_s21, 128  ;;  %p826_p1 = scmp.lt.s32.totalorder (!%p162_p10), %s1150_s21, %s824_s30 }
  0x15   : > { %p820_p12 = scmp.ne.s32.totalorder (!%p162_p10), %s1150_s21, %s819_s29 }
  0x16   : > { %s1209_s28 = smov (!%p192_p11, %s622_s28), 15 }
  0x17   : > { %s760_s4 = smul.u32 20, %s1209_s28  ;;  %s530_s28 = scalar_lea.sflag [#allocation4], %s187_s8 }
  0x18   : > { %p821_p13 = pnand %p820_p12, %p963_p4 }
  0x19   : > { %s989_s7 = scalar_lea.vmem %s1195_s0, %s760_s4  ;;  %s825_s4 = scalar_lea.vmem %s824_s30, 256 }
  0x1a   : > { %v631_v4 = vld [vmem:[%s989_s7] sm:$0xff]   ;;  %v718_v5 = vld [vmem:[%s989_s7 + $0x8] sm:$0xff]   ;;  %v719_v9 = vld [vmem:[%s989_s7 + $0x10] sm:$0xff]   ;;  %p822_p0 = pneg %p821_p13  ;;  %p827_p2 = scmp.lt.s32.totalorder %s825_s4, %s819_s29 }
  0x1b   : > { %v632_v6 = vunpack.c.l.bf16 %v631_v4  ;;  %v633_v7 = vunpack.c.h.bf16 %v631_v4  ;;  %v636_v8 = vunpack.c.l.bf16 %v718_v5  ;;  %v995_v10 = vld [vmem:[%s989_s7 + $0x18] sm:$0xff]   ;;  %v998_v11 = vld [vmem:[%s989_s7 + $0x20] sm:$0xff]   ;;  %v637_v12 = vunpack.c.h.bf16 %v718_v5  ;;  %v722_v16 = vld [vmem:[%s989_s7 + $0x28] sm:$0xff]  }
  0x1c   : > { %v640_v13 = vunpack.c.l.bf16 %v719_v9  ;;  %v641_v14 = vunpack.c.h.bf16 %v719_v9  ;;  %v644_v15 = vunpack.c.l.bf16 %v995_v10  ;;  %v1003_v17 = vld [vmem:[%s989_s7 + $0x30] sm:$0xff]   ;;  %v1006_v18 = vld [vmem:[%s989_s7 + $0x38] sm:$0xff]   ;;  %v645_v19 = vunpack.c.h.bf16 %v995_v10  ;;  %v1012_v23 = vld [vmem:[%s989_s7 + $0x40] sm:$0xff]   ;;  %p828_p3 = por %p827_p2, %p826_p1 }
  0x1d   : > { %v648_v20 = vunpack.c.l.bf16 %v998_v11  ;;  %v649_v21 = vunpack.c.h.bf16 %v998_v11  ;;  %v652_v22 = vunpack.c.l.bf16 %v722_v16  ;;  %v1015_v24 = vld [vmem:[%s989_s7 + $0x48] sm:$0xff]   ;;  %v1018_v25 = vld [vmem:[%s989_s7 + $0x50] sm:$0xff]   ;;  %v653_v26 = vunpack.c.h.bf16 %v722_v16  ;;  %v1024_v30 = vld [vmem:[%s989_s7 + $0x58] sm:$0xff]  }
  0x1e   : > { %v656_v27 = vunpack.c.l.bf16 %v1003_v17  ;;  %v657_v28 = vunpack.c.h.bf16 %v1003_v17  ;;  %v660_v29 = vunpack.c.l.bf16 %v1006_v18  ;;  %v1027_v31 = vld [vmem:[%s989_s7 + $0x60] sm:$0xff]   ;;  %v1030_v32 = vld [vmem:[%s989_s7 + $0x68] sm:$0xff]   ;;  %v661_v33 = vunpack.c.h.bf16 %v1006_v18  ;;  %v1037_v37 = vld [vmem:[%s989_s7 + $0x70] sm:$0xff]   ;;  %p829_p5 = pnand %p828_p3, %p822_p0 }
  0x1f   : > { %v664_v34 = vunpack.c.l.bf16 %v1012_v23  ;;  %v665_v35 = vunpack.c.h.bf16 %v1012_v23  ;;  %v668_v36 = vunpack.c.l.bf16 %v1015_v24  ;;  %v1040_v38 = vld [vmem:[%s989_s7 + $0x78] sm:$0xff]   ;;  %v669_v39 = vunpack.c.h.bf16 %v1015_v24  ;;  %v1047_v43 = vld [vmem:[%s989_s7 + $0x80] sm:$0xff]   ;;  %v1054_v48 = vld [vmem:[%s989_s7 + $0x88] sm:$0xff]  }
  0x20   : > { %v672_v40 = vunpack.c.l.bf16 %v1018_v25  ;;  %v673_v41 = vunpack.c.h.bf16 %v1018_v25  ;;  %v676_v42 = vunpack.c.l.bf16 %v1024_v30  ;;  %v677_v44 = vunpack.c.h.bf16 %v1024_v30  ;;  %v1057_v49 = vld [vmem:[%s989_s7 + $0x90] sm:$0xff]   ;;  %v1060_v50 = vld [vmem:[%s989_s7 + $0x98] sm:$0xff]  }
  0x21   : > { %v680_v45 = vunpack.c.l.bf16 %v1027_v31  ;;  %v681_v46 = vunpack.c.h.bf16 %v1027_v31  ;;  %v684_v47 = vunpack.c.l.bf16 %v1030_v32  ;;  %v685_v51 = vunpack.c.h.bf16 %v1030_v32 }
  0x22   : > { %v688_v52 = vunpack.c.l.bf16 %v1037_v37  ;;  %v689_v53 = vunpack.c.h.bf16 %v1037_v37  ;;  %v692_v54 = vunpack.c.l.bf16 %v1040_v38  ;;  %v693_v55 = vunpack.c.h.bf16 %v1040_v38 }
  0x23   : > { %v696_v56 = vunpack.c.l.bf16 %v1047_v43  ;;  %v697_v57 = vunpack.c.h.bf16 %v1047_v43  ;;  %v700_v58 = vunpack.c.l.bf16 %v1054_v48  ;;  %v701_v59 = vunpack.c.h.bf16 %v1054_v48 }
  0x24   : > { %v704_v60 = vunpack.c.l.bf16 %v1057_v49  ;;  %v705_v61 = vunpack.c.h.bf16 %v1057_v49  ;;  %v708_v62 = vunpack.c.l.bf16 %v1060_v50  ;;  %v290_v63 = vsel %vm206_vm0, %v632_v6, 0.0 }
  0x25   : > { %v291_v0 = vsel %vm206_vm0, %v633_v7, 0.0  ;;  %v293_v1 = vsel %vm206_vm0, %v636_v8, 0.0  ;;  %v295_v2 = vsel %vm206_vm0, %v637_v12, 0.0  ;;  %v297_v4 = vsel %vm206_vm0, %v640_v13, 0.0 }
  0x26   : > { %v292_v3 = vadd.f32 %v291_v0, %v290_v63  ;;  %v305_v5 = vsel %vm206_vm0, %v641_v14, 0.0  ;;  %v306_v9 = vsel %vm206_vm0, %v644_v15, 0.0  ;;  %v308_v11 = vsel %vm206_vm0, %v645_v19, 0.0 }
  0x27   : > { %v307_v10 = vadd.f32 %v306_v9, %v305_v5  ;;  %v310_v16 = vsel %vm206_vm0, %v648_v20, 0.0  ;;  %v312_v6 = vsel %vm206_vm0, %v649_v21, 0.0  ;;  %v320_v7 = vsel %vm206_vm0, %v652_v22, 0.0 }
  0x28   : > { %v294_v17 = vadd.f32 %v293_v1, %v292_v3  ;;  %v321_v8 = vsel %vm206_vm0, %v653_v26, 0.0  ;;  %v323_v12 = vsel %vm206_vm0, %v656_v27, 0.0  ;;  %v325_v14 = vsel %vm206_vm0, %v657_v28, 0.0 }
  0x29   : > { %v309_v18 = vadd.f32 %v308_v11, %v307_v10  ;;  %v322_v13 = vadd.f32 %v321_v8, %v320_v7  ;;  %v327_v15 = vsel %vm206_vm0, %v660_v29, 0.0  ;;  %v335_v19 = vsel %vm206_vm0, %v661_v33, 0.0 }
  0x2a   : > { %v296_v23 = vadd.f32 %v295_v2, %v294_v17  ;;  %v336_v20 = vsel %vm206_vm0, %v664_v34, 0.0  ;;  %v338_v21 = vsel %vm206_vm0, %v665_v35, 0.0  ;;  %v340_v26 = vsel %vm206_vm0, %v668_v36, 0.0 }
  0x2b   : > { %v311_v24 = vadd.f32 %v310_v16, %v309_v18  ;;  %v324_v25 = vadd.f32 %v323_v12, %v322_v13  ;;  %v337_v22 = vadd.f32 %v336_v20, %v335_v19  ;;  %v342_v27 = vsel %vm206_vm0, %v669_v39, 0.0 }
  0x2c   : > { %v298_v30 = vadd.f32 %v297_v4, %v296_v23  ;;  %v350_v31 = vsel %vm206_vm0, %v672_v40, 0.0  ;;  %v351_v28 = vsel %vm206_vm0, %v673_v41, 0.0  ;;  %v353_v34 = vsel %vm206_vm0, %v676_v42, 0.0 }
  0x2d   : > { %v313_v29 = vadd.f32 %v312_v6, %v311_v24  ;;  %v326_v32 = vadd.f32 %v325_v14, %v324_v25  ;;  %v339_v63 = vadd.f32 %v338_v21, %v337_v22  ;;  %v352_v33 = vadd.f32 %v351_v28, %v350_v31 }
  0x2e   : > { %v299_v0 = vrot.slane %v298_v30, 4  ;;  %v355_v35 = vsel %vm206_vm0, %v677_v44, 0.0  ;;  %v357_v1 = vsel %vm206_vm0, %v680_v45, 0.0  ;;  %v365_v40 = vsel %vm206_vm0, %v681_v46, 0.0 }
  0x2f   : > { %v314_v2 = vrot.slane %v313_v29, 4  ;;  %v328_v36 = vadd.f32 %v327_v15, %v326_v32  ;;  %v341_v3 = vadd.f32 %v340_v26, %v339_v63  ;;  %v354_v4 = vadd.f32 %v353_v34, %v352_v33 }
  0x30   : > { %v300_v39 = vadd.f32 %v299_v0, %v298_v30  ;;  %v366_v41 = vsel %vm206_vm0, %v684_v47, 0.0  ;;  %v368_v5 = vsel %vm206_vm0, %v685_v51, 0.0  ;;  %v370_v44 = vsel %vm206_vm0, %v688_v52, 0.0 }
  0x31   : > { %v315_v9 = vadd.f32 %v314_v2, %v313_v29  ;;  %v329_v10 = vrot.slane %v328_v36, 4  ;;  %v343_v11 = vadd.f32 %v342_v27, %v341_v3  ;;  %v356_v16 = vadd.f32 %v355_v35, %v354_v4 }
  0x32   : > { %v301_v42 = vrot.slane %v300_v39, 2  ;;  %v367_v6 = vadd.f32 %v366_v41, %v365_v40  ;;  %v372_v45 = vsel %vm206_vm0, %v689_v53, 0.0  ;;  %v380_v12 = vsel %vm206_vm0, %v692_v54, 0.0 }
  0x33   : > { %v316_v17 = vrot.slane %v315_v9, 2  ;;  %v330_v46 = vadd.f32 %v329_v10, %v328_v36  ;;  %v344_v7 = vrot.slane %v343_v11, 4  ;;  %v358_v47 = vadd.f32 %v357_v1, %v356_v16 }
  0x34   : > { %v302_v51 = vadd.f32 %v301_v42, %v300_v39  ;;  %v369_v8 = vadd.f32 %v368_v5, %v367_v6  ;;  %v381_v18 = vsel %vm206_vm0, %v693_v55, 0.0  ;;  %v383_v19 = vsel %vm206_vm0, %v696_v56, 0.0 }
  0x35   : > { %v317_v52 = vadd.f32 %v316_v17, %v315_v9  ;;  %v331_v13 = vrot.slane %v330_v46, 2  ;;  %v345_v37 = vadd.f32 %v344_v7, %v343_v11  ;;  %v359_v14 = vrot.slane %v358_v47, 4 }
  0x36   : > { %v303_v53 = vrot.slane %v302_v51, 1  ;;  %v371_v15 = vadd.f32 %v370_v44, %v369_v8  ;;  %v382_v23 = vadd.f32 %v381_v18, %v380_v12  ;;  %v385_v55 = vsel %vm206_vm0, %v697_v57, 0.0  ;;  %v208_v12 = vld [vmem:[#allocation2] sm:$0xff] }
  0x37   : > { %v318_v20 = vrot.slane %v317_v52, 1  ;;  %v332_v21 = vadd.f32 %v331_v13, %v330_v46  ;;  %v346_v24 = vrot.slane %v345_v37, 2  ;;  %v360_v25 = vadd.f32 %v359_v14, %v358_v47 }
  0x38   : > { %v304_v54 = vadd.f32 %v303_v53, %v302_v51  ;;  %v373_v22 = vadd.f32 %v372_v45, %v371_v15  ;;  %v384_v38 = vadd.f32 %v383_v19, %v382_v23  ;;  %v387_v56 = vsel %vm206_vm0, %v700_v58, 0.0  ;;  %v624_v53 = vld [vmem:[%s1197_s2] ss:$0 sm:$0xff] }
  0x39   : > { %v319_v26 = vadd.f32 %v318_v20, %v317_v52  ;;  %v333_v30 = vrot.slane %v332_v21, 1  ;;  %v347_v27 = vadd.f32 %v346_v24, %v345_v37  ;;  %v361_v31 = vrot.slane %v360_v25, 2 }
  0x3a   : > { %v374_v28 = vrot.slane %v373_v22, 4  ;;  %v386_v29 = vadd.f32 %v385_v55, %v384_v38  ;;  %v395_v32 = vsel %vm206_vm0, %v701_v59, 0.0  ;;  %v709_v63 = vunpack.c.h.bf16 %v1060_v50 }
  0x3b   : > { %v348_v33 = vrot.slane %v347_v27, 1  ;;  %v362_v43 = vadd.f32 %v361_v31, %v360_v25  ;;  %v396_v57 = vsel %vm206_vm0, %v704_v60, 0.0  ;;  %v398_v1 = vsel %vm206_vm0, %v705_v61, 0.0 }
  0x3c   : > { %v375_v0 = vadd.f32 %v374_v28, %v373_v22  ;;  %v388_v34 = vadd.f32 %v387_v56, %v386_v29  ;;  %v397_v35 = vadd.f32 %v396_v57, %v395_v32  ;;  %v334_v58 = vadd.f32 %v333_v30, %v332_v21 }
  0x3d   : > { %v400_v48 = vsel %vm206_vm0, %v708_v62, 0.0  ;;  %v419_v3 = vsel %vm418_vm2, %v319_v26, %v304_v54  ;;  %v363_v4 = vrot.slane %v362_v43, 1  ;;  %v402_v60 = vsel %vm206_vm0, %v709_v63, 0.0 }
  0x3e   : > { %v376_v59 = vrot.slane %v375_v0, 2  ;;  %v389_v2 = vrot.slane %v388_v34, 4  ;;  %v399_v36 = vadd.f32 %v398_v1, %v397_v35  ;;  %v349_v39 = vadd.f32 %v348_v33, %v347_v27 }
  0x3f   : > { %v421_v5 = vsel %vm420_vm3, %v334_v58, %v419_v3  ;;  %v364_v10 = vadd.f32 %v363_v4, %v362_v43 }
  0x40   : > { %v377_v40 = vadd.f32 %v376_v59, %v375_v0  ;;  %v390_v41 = vadd.f32 %v389_v2, %v388_v34  ;;  %v401_v49 = vadd.f32 %v400_v48, %v399_v36  ;;  %v423_v16 = vsel %vm422_vm4, %v349_v39, %v421_v5 }
  0x41   : > { %v425_v45 = vsel %vm424_vm5, %v364_v10, %v423_v16 }
  0x42   : > { %v378_v61 = vrot.slane %v377_v40, 1  ;;  %v391_v9 = vrot.slane %v390_v41, 2  ;;  %v403_v50 = vadd.f32 %v402_v60, %v401_v49 }
  0x44   : > { %v392_v62 = vadd.f32 %v391_v9, %v390_v41  ;;  %v404_v11 = vrot.slane %v403_v50, 4  ;;  %v379_v42 = vadd.f32 %v378_v61, %v377_v40 }
  0x46   : > { %v393_v6 = vrot.slane %v392_v62, 1  ;;  %v405_v44 = vadd.f32 %v404_v11, %v403_v50  ;;  %v427_v47 = vsel %vm426_vm6, %v379_v42, %v425_v45 }
  0x48   : > { %v406_v17 = vrot.slane %v405_v44, 2  ;;  %v394_v46 = vadd.f32 %v393_v6, %v392_v62 }
  0x4a   : > { %v407_v7 = vadd.f32 %v406_v17, %v405_v44  ;;  %v429_v8 = vsel %vm428_vm7, %v394_v46, %v427_v47 }
  0x4c   : > { %v408_v51 = vrot.slane %v407_v7, 1 }
  0x4e   : > { %v409_v18 = vadd.f32 %v408_v51, %v407_v7 }
  0x50   : > { %v431_v52 = vsel %vm430_vm8, %v409_v18, %v429_v8 }
  0x51   : > { %v433_v13 = vadd.f32 %v431_v52, %v208_v12 }
  0x53   : > { %434 = vst.msk [vmem:[#allocation2] sm:$0xff] %vm206_vm0, %v433_v13 }
  0x5a   : > { %v438_v37 = vld [vmem:[#allocation2] sm:$0xff] }
  0x5b   : > { %v439_v14 = vmul.f32 0.025, %v438_v37 }
  0x5d   : > { %752 = vmatmul.mubr.msk.f32.vlgmr.msra.gmra.mrb[0].mxu0 %vm206_vm0, %v439_v14 }
 0x130   : > { %v524_v15 = vpop.f32.mrb[0].mxu0 }
 0x131   : > { %v525_v23 = vadd.f32 %v624_v53, %v524_v15  ;;  %v753_v19 = vpop.f32.mrb[1].mxu0 }
 0x133   : > { %528 = vst [vmem:[%s189_s19] sm:$0xff] %v525_v23 }
 0x134   : > { %832 = shalt.err (!%p829_p5)
}
 0x135   : > { %s833_s5 = scalar_lea.hbm %s1148_s27, 128  ;;  %s837_s8 = scalar_lea.hbm %s1198_s3, 256 }
 0x136   : > { %p834_p6 = scmp.ne.s32.totalorder %s1148_s27, %s833_s5  ;;  %p838_p10 = scmp.lt.u32.totalorder %s1148_s27, %s1198_s3 }
 0x137   : > { %p839_p11 = scmp.lt.u32.totalorder %s837_s8, %s833_s5  ;;  %p841_p13 = scmp.lt.u32.totalorder %s833_s5, %s1148_s27 }
 0x138   : > { %p835_p7 = pnand %p834_p6, %p963_p4 }
 0x139   : > { %p840_p12 = por %p839_p11, %p838_p10 }
 0x13a   : > { %p836_p9 = pneg %p835_p7 }
 0x13b   : > { %p842_p0 = por %p841_p13, %p840_p12 }
 0x13d   : > { %p843_p1 = pnand %p842_p0, %p836_p9 }
 0x13f   : > { %846 = shalt.err (!%p843_p1)
}
 0x140   : > { %761 = dma.vmem_to_hbm [thread:$0]  (%p963_p4), %s1150_s21, 128, %s1148_s27, %s530_s28  }
 0x141 PF: > { %p767_p2 = scmp.ge.s32.totalorder %s897_s17, 2  ;;  %s555_s11 = sand.u32 1, %s877_s12  }
 0x142   : > { %s556_s18 = scalar_lea.sflag [#allocation4], %s555_s11 }
 0x143   : > { %p764_p3 = pnand %p767_p2, %p970_p8 }
 0x145   : > { %872 = dma.done.wait (!%p764_p3), %s556_s18, 128  }
 0x146   : > { %874 = vsyncadd (!%p764_p3), %s556_s18, 4294967168  ;;  %s16_s17 = sadd.s32 1, %s897_s17   ;;  %s1201_s12 = smov %s881_s13 }
 0x147   : > { %p13_p5 = scmp.ge.s32.totalorder %s16_s17, 4   ;;  %s1202_s13 = smov %s885_s14 }
 0x148   : > { %s1203_s14 = smov %s976_s25  ;;  %s1204_s15 = smov %s893_s16 }
 0x149   : > { %s1205_s16 = smov %s1207_s20  ;;  %15 = sbr.rel (!%p13_p5) target bundleno = 4 (0x4), region = 75 }
 0x150   :  { %561 = vsyncpa [#allocation4], 1 }
 0x151   :  { %563 = vsyncpa [#allocation4 + $0x1], 1 }

</bundles_post_ra>
